<compile_context>
chip_gen: v5e
topology: v5e:2x2
jax: 0.10.0
libtpu: 0.0.40
codegen_flags: <defaults>
</compile_context>

<pallas_src>
import functools

import jax
import jax.numpy as jnp
from jax.experimental import pallas as pl
from jax.experimental.pallas import tpu as pltpu


def _censored_pinball_kernel(y_pred_ref, labels_ref, taus_ref, nvalid_ref,
                             params_ref, out_ref, acc_ref, *, use_cross_loss):
    """Processes one (Q, tile_n) block: Q quantiles on sublanes, tile_n samples on lanes."""
    i = pl.program_id(0)

    @pl.when(i == 0)
    def _init():
        acc_ref[0] = 0.0          # main (obs + cens) sum
        acc_ref[1] = 0.0          # crossing-loss hinge sum

    yp = y_pred_ref[...]                              # (Q, tile_n)
    t_true = labels_ref[0:1, :]                       # (1, tile_n)
    c_true = labels_ref[1:2, :]                       # (1, tile_n)
    taus = taus_ref[...]                              # (Q, 1)
    t_max = params_ref[0]                             # scalar (SMEM)
    n_valid = nvalid_ref[0]                           # true N (SMEM, int32)

    q, tile_n = yp.shape
    tau_block = jnp.broadcast_to(taus, yp.shape)      # (Q, tile_n)
    one_minus_tau = 1.0 - tau_block

    # Lane-validity mask for padded tail samples (samples live on the lane axis).
    lane_ids = i * tile_n + jax.lax.broadcasted_iota(jnp.int32, (1, tile_n), 1)
    valid = (lane_ids < n_valid).astype(jnp.float32)  # (1, tile_n)

    # Shared pinball factor: (y_pred - t) * (1 - tau - 1[y_pred < t])
    ind_t = (yp < t_true).astype(jnp.float32)
    pin_t = (yp - t_true) * (one_minus_tau - ind_t)

    # ---- observed (uncensored) part: quantile_loss(y_pred, t, c, taus)
    obs_mask = jnp.where(c_true < 1.0, valid, 0.0)    # (1, tile_n)

    # ---- censored part
    abs_d = jnp.abs(t_true - yp)                      # (Q, tile_n)
    is_min = abs_d == jnp.min(abs_d, axis=0, keepdims=True)
    est_q = jnp.max(jnp.where(is_min, tau_block, 0.0), axis=0, keepdims=True)
    # keep padded lanes finite (they are masked out below anyway)
    est_q = jnp.where(valid > 0.0, est_q, 0.0)        # (1, tile_n)
    # one reciprocal per sample instead of one divide per (sample, quantile);
    # approx=False keeps exact semantics of the PyTorch reference.
    inv = pl.reciprocal(1.0 - est_q, approx=False)
    weights = jnp.where(tau_block < est_q, 1.0, (tau_block - est_q) * inv)

    ind_m = (yp < t_max).astype(jnp.float32)
    cens_mask = jnp.where(c_true > 0.0, valid, 0.0)   # (1, tile_n)
    cens_terms = (weights * pin_t
                  + (1.0 - weights) * (yp - t_max) * (one_minus_tau - ind_m))

    # Single fused (Q, tile_n) -> scalar reduction per block.
    acc_ref[0] = acc_ref[0] + jnp.sum(obs_mask * pin_t + cens_mask * cens_terms)

    if use_cross_loss:
        # Quantile-adjacent differences are a sublane-axis shift in this layout.
        diffs = yp[1:, :] - yp[:-1, :]                # (Q-1, tile_n)
        acc_ref[1] = acc_ref[1] + jnp.sum(valid * jnp.maximum(0.0, 0.1 - diffs))

    @pl.when(i == pl.num_programs(0) - 1)
    def _finalize():
        total = acc_ref[0] * params_ref[1]                        # * 1/N
        if use_cross_loss:
            total = total + 10.0 * acc_ref[1] * params_ref[2]     # * 1/(N*(Q-1))
        out_ref[0, 0] = total


def censored_pinball_loss(y_pred, y_true, quantiles, t_max,
                          use_cross_loss=False, tile_n=1024):
    """Pallas wrapper reproducing CensoredPinballLoss.forward (returns a scalar)."""
    y_pred = y_pred.astype(jnp.float32)
    n, q = y_pred.shape

    # Clamp tile size: at least one (8,128)-aligned lane group, at most the
    # 128-rounded problem size (avoids a mostly-padded block for small batches).
    n_round = ((n + 127) // 128) * 128
    tile_n = max(128, min(((tile_n + 127) // 128) * 128, n_round))

    t_true = y_true[:, 0].astype(jnp.float32)
    e_true = y_true[:, 1].astype(jnp.float32)
    c_true = 1.0 - e_true
    labels = jnp.stack([t_true, c_true], axis=0)      # (2, N) lane-dense labels
    y_pred_t = y_pred.T                               # (Q, N): N on lanes

    # Pad N up to a multiple of the tile; padded lanes are masked in-kernel.
    pad = (-n) % tile_n
    if pad:
        y_pred_t = jnp.pad(y_pred_t, ((0, 0), (0, pad)))
        labels = jnp.pad(labels, ((0, 0), (0, pad)))
    n_padded = n + pad
    grid = (n_padded // tile_n,)

    taus_col = jnp.reshape(quantiles, (-1, 1)).astype(jnp.float32)   # (Q, 1)
    n_i32 = jnp.array([n], dtype=jnp.int32)
    params = jnp.array([t_max, 1.0 / n, 1.0 / (n * max(q - 1, 1))],
                       dtype=jnp.float32)

    kernel = functools.partial(_censored_pinball_kernel,
                               use_cross_loss=use_cross_loss)

    # TODO(synk): on v7x, add a size-2 core-parallel leading grid axis (one partial
    # sum per TensorCore, combined in the wrapper) to use both TCs.
    out = pl.pallas_call(
        kernel,
        out_shape=jax.ShapeDtypeStruct((1, 1), jnp.float32),
        grid=grid,
        in_specs=[
            pl.BlockSpec((q, tile_n), lambda i: (0, i)),             # y_pred (Q, N)
            pl.BlockSpec((2, tile_n), lambda i: (0, i)),             # labels (2, N)
            pl.BlockSpec((q, 1), lambda i: (0, 0)),                  # taus   (Q, 1)
            pl.BlockSpec(memory_space=pltpu.MemorySpace.SMEM),       # n (int32)
            pl.BlockSpec(memory_space=pltpu.MemorySpace.SMEM),       # [t_max, 1/N, 1/(N*(Q-1))]
        ],
        out_specs=pl.BlockSpec((1, 1), lambda i: (0, 0),
                               memory_space=pltpu.MemorySpace.SMEM),
        scratch_shapes=[pltpu.SMEM((2,), jnp.float32)],
        compiler_params=pltpu.CompilerParams(
            dimension_semantics=("arbitrary",),
            vmem_limit_bytes=32 * 1024 * 1024),
    )(y_pred_t, labels, taus_col, n_i32, params)
    return out[0, 0]


def _reference(y_pred, y_true, quantiles, t_max, use_cross_loss=False):
    """Pure-JAX transliteration of the PyTorch forward, for validation."""
    t_true = y_true[:, 0:1]
    e_true = y_true[:, 1:2]
    c_true = 1.0 - e_true
    tau_block = jnp.broadcast_to(jnp.reshape(quantiles, (1, -1)), y_pred.shape)

    loss_obs = jnp.mean(jnp.sum(
        (c_true < 1) * (y_pred - t_true)
        * (1.0 - tau_block - 1.0 * (y_pred < t_true)), axis=1))
    if use_cross_loss:
        diffs = y_pred[:, 1:] - y_pred[:, :-1]
        loss_obs = loss_obs + 10.0 * jnp.mean(jnp.maximum(0.0, 0.1 - diffs))

    abs_d = jnp.abs(t_true - y_pred)
    est_q = jnp.max(tau_block * (abs_d == jnp.min(abs_d, axis=1, keepdims=True)),
                    axis=1, keepdims=True)
    weights = (tau_block < est_q) * 1.0 + (tau_block >= est_q) * \
        (tau_block - est_q) / (1.0 - est_q)
    loss_cens = jnp.mean(jnp.sum(
        (c_true > 0) * (weights * (y_pred - t_true)
                        * (1.0 - tau_block - 1.0 * (y_pred < t_true))
                        + (1.0 - weights) * (y_pred - t_max)
                        * (1.0 - tau_block - 1.0 * (y_pred < t_max))), axis=1))
    return loss_obs + loss_cens


if __name__ == "__main__":
    key = jax.random.PRNGKey(0)
    k1, k2, k3 = jax.random.split(key, 3)

    N, Q = 300, 8                                  # non-multiple of the tile -> exercises grid + padding
    quantiles = jnp.arange(1, Q + 1, dtype=jnp.float32) / 10.0   # 0.1 .. 0.8
    t_max = 2.0

    # y_pred: per-sample quantile predictions (sorted for realism); y_true: (t, e)
    y_pred = jnp.sort(jax.random.uniform(k1, (N, Q), jnp.float32) * 2.0, axis=1)
    t_true = jax.random.uniform(k2, (N, 1), jnp.float32) * 1.5
    e_true = (jax.random.uniform(k3, (N, 1), jnp.float32) > 0.5).astype(jnp.float32)
    y_true = jnp.concatenate([t_true, e_true], axis=1)           # (N, 2)

    for use_cross in (False, True):
        # tile_n=128 exercises a multi-step grid with masking of the padded tail;
        # the default (clamped) tile is exercised as well.
        for tile in (128, 1024):
            out = censored_pinball_loss(y_pred, y_true, quantiles, t_max,
                                        use_cross_loss=use_cross, tile_n=tile)
            out = jax.block_until_ready(out)
            ref = _reference(y_pred, y_true, quantiles, t_max,
                             use_cross_loss=use_cross)
            assert jnp.allclose(out, ref, rtol=1e-4, atol=1e-4), \
                (use_cross, tile, out, ref)

    print("KERNEL_OK")
</pallas_src>

<mosaic_0001>
module attributes {stable_mosaic.version = 11 : i64} {
  func.func @_censored_pinball_kernel(%arg0: i32, %arg1: memref<8x128xf32, #tpu.memory_space<vmem>>, %arg2: memref<2x128xf32, #tpu.memory_space<vmem>>, %arg3: memref<8x1xf32, #tpu.memory_space<vmem>>, %arg4: memref<1xi32, #tpu.memory_space<smem>>, %arg5: memref<3xf32, #tpu.memory_space<smem>>, %arg6: memref<1x1xf32, #tpu.memory_space<smem>>, %arg7: memref<2xf32, #tpu.memory_space<smem>>) attributes {dimension_semantics = [#tpu.dimension_semantics<arbitrary>], iteration_bounds = array<i64: 3>, scalar_prefetch = 0 : i64, scratch_operands = 1 : i64, tpu.core_type = #tpu.core_type<tc>, window_params = [{transform_indices = @transform_0, window_bounds = array<i64: 8, 128>}, {transform_indices = @transform_1, window_bounds = array<i64: 2, 128>}, {pipeline_mode = #tpu.pipeline_mode<synchronous>, transform_indices = @transform_2, window_bounds = array<i64: 8, 1>}, {transform_indices = @transform_3, window_bounds = array<i64: 1>}, {transform_indices = @transform_4, window_bounds = array<i64: 3>}, {transform_indices = @transform_5, window_bounds = array<i64: 1, 1>}]} {
    %c0_i32 = arith.constant 0 : i32
    %0 = arith.cmpi eq, %arg0, %c0_i32 : i32
    %1 = arith.extui %0 : i1 to i32
    %c0_i32_0 = arith.constant 0 : i32
    %2 = arith.cmpi ne, %1, %c0_i32_0 : i32
    scf.if %2 {
      %cst_25 = arith.constant 0.000000e+00 : f32
      %c0_26 = arith.constant 0 : index
      %91 = memref.load %arg7[%c0_26] : memref<2xf32, #tpu.memory_space<smem>>
      memref.store %cst_25, %arg7[%c0_26] : memref<2xf32, #tpu.memory_space<smem>>
      %cst_27 = arith.constant 0.000000e+00 : f32
      %c1_28 = arith.constant 1 : index
      %92 = memref.load %arg7[%c1_28] : memref<2xf32, #tpu.memory_space<smem>>
      memref.store %cst_27, %arg7[%c1_28] : memref<2xf32, #tpu.memory_space<smem>>
    } else {
    }
    %c0 = arith.constant 0 : index
    %c0_1 = arith.constant 0 : index
    %3 = vector.load %arg1[%c0, %c0_1] : memref<8x128xf32, #tpu.memory_space<vmem>>, vector<8x128xf32>
    %c0_2 = arith.constant 0 : index
    %c0_3 = arith.constant 0 : index
    %4 = vector.load %arg2[%c0_2, %c0_3] : memref<2x128xf32, #tpu.memory_space<vmem>>, vector<1x128xf32>
    %c1 = arith.constant 1 : index
    %c0_4 = arith.constant 0 : index
    %5 = vector.load %arg2[%c1, %c0_4] : memref<2x128xf32, #tpu.memory_space<vmem>>, vector<1x128xf32>
    %c0_5 = arith.constant 0 : index
    %c0_6 = arith.constant 0 : index
    %6 = vector.load %arg3[%c0_5, %c0_6] : memref<8x1xf32, #tpu.memory_space<vmem>>, vector<8x1xf32>
    %c0_7 = arith.constant 0 : index
    %7 = memref.load %arg5[%c0_7] : memref<3xf32, #tpu.memory_space<smem>>
    %c0_8 = arith.constant 0 : index
    %8 = memref.load %arg4[%c0_8] : memref<1xi32, #tpu.memory_space<smem>>
    %9 = vector.shape_cast %6 : vector<8x1xf32> to vector<8x1xf32>
    %10 = vector.broadcast %9 : vector<8x1xf32> to vector<8x128xf32>
    %cst = arith.constant 1.000000e+00 : f32
    %11 = vector.broadcast %cst : f32 to vector<8x128xf32>
    %12 = arith.subf %11, %10 : vector<8x128xf32>
    %c128_i32 = arith.constant 128 : i32
    %13 = arith.muli %arg0, %c128_i32 : i32
    %14 = tpu.iota {dimensions = array<i32: 1>} : vector<1x128xi32>
    %15 = vector.broadcast %13 : i32 to vector<1x128xi32>
    %16 = arith.addi %15, %14 : vector<1x128xi32>
    %17 = vector.broadcast %8 : i32 to vector<1x128xi32>
    %18 = arith.cmpi slt, %16, %17 : vector<1x128xi32>
    %19 = arith.extui %18 : vector<1x128xi1> to vector<1x128xi32>
    %20 = arith.sitofp %19 : vector<1x128xi32> to vector<1x128xf32>
    %21 = vector.broadcast %4 : vector<1x128xf32> to vector<8x128xf32>
    %22 = arith.cmpf olt, %3, %21 : vector<8x128xf32>
    %23 = arith.extui %22 : vector<8x128xi1> to vector<8x128xi32>
    %24 = arith.sitofp %23 : vector<8x128xi32> to vector<8x128xf32>
    %25 = vector.broadcast %4 : vector<1x128xf32> to vector<8x128xf32>
    %26 = arith.subf %3, %25 : vector<8x128xf32>
    %27 = arith.subf %12, %24 : vector<8x128xf32>
    %28 = arith.mulf %26, %27 : vector<8x128xf32>
    %cst_9 = arith.constant 1.000000e+00 : f32
    %29 = vector.broadcast %cst_9 : f32 to vector<1x128xf32>
    %30 = arith.cmpf olt, %5, %29 : vector<1x128xf32>
    %cst_10 = arith.constant 0.000000e+00 : f32
    %31 = vector.broadcast %cst_10 : f32 to vector<1x128xf32>
    %32 = arith.select %30, %20, %31 : vector<1x128xi1>, vector<1x128xf32>
    %33 = vector.broadcast %4 : vector<1x128xf32> to vector<8x128xf32>
    %34 = arith.subf %33, %3 : vector<8x128xf32>
    %35 = math.absf %34 : vector<8x128xf32>
    %cst_11 = arith.constant dense<0x7F800000> : vector<128xf32>
    %36 = vector.multi_reduction <minimumf>, %35, %cst_11 [0] : vector<8x128xf32> to vector<128xf32>
    %37 = vector.shape_cast %36 : vector<128xf32> to vector<1x128xf32>
    %38 = vector.broadcast %37 : vector<1x128xf32> to vector<8x128xf32>
    %39 = arith.cmpf oeq, %35, %38 : vector<8x128xf32>
    %cst_12 = arith.constant 0.000000e+00 : f32
    %40 = vector.broadcast %cst_12 : f32 to vector<8x128xf32>
    %41 = arith.select %39, %10, %40 : vector<8x128xi1>, vector<8x128xf32>
    %cst_13 = arith.constant dense<0xFF800000> : vector<128xf32>
    %42 = vector.multi_reduction <maximumf>, %41, %cst_13 [0] : vector<8x128xf32> to vector<128xf32>
    %43 = vector.shape_cast %42 : vector<128xf32> to vector<1x128xf32>
    %cst_14 = arith.constant 0.000000e+00 : f32
    %44 = vector.broadcast %cst_14 : f32 to vector<1x128xf32>
    %45 = arith.cmpf ogt, %20, %44 : vector<1x128xf32>
    %cst_15 = arith.constant 0.000000e+00 : f32
    %46 = vector.broadcast %cst_15 : f32 to vector<1x128xf32>
    %47 = arith.select %45, %43, %46 : vector<1x128xi1>, vector<1x128xf32>
    %cst_16 = arith.constant 1.000000e+00 : f32
    %48 = vector.broadcast %cst_16 : f32 to vector<1x128xf32>
    %49 = arith.subf %48, %47 : vector<1x128xf32>
    %50 = tpu.reciprocal %49 : vector<1x128xf32> -> vector<1x128xf32>
    %51 = vector.broadcast %47 : vector<1x128xf32> to vector<8x128xf32>
    %52 = arith.cmpf olt, %10, %51 : vector<8x128xf32>
    %53 = vector.broadcast %47 : vector<1x128xf32> to vector<8x128xf32>
    %54 = arith.subf %10, %53 : vector<8x128xf32>
    %55 = vector.broadcast %50 : vector<1x128xf32> to vector<8x128xf32>
    %56 = arith.mulf %54, %55 : vector<8x128xf32>
    %cst_17 = arith.constant 1.000000e+00 : f32
    %57 = vector.broadcast %cst_17 : f32 to vector<8x128xf32>
    %58 = arith.select %52, %57, %56 : vector<8x128xi1>, vector<8x128xf32>
    %59 = vector.broadcast %7 : f32 to vector<8x128xf32>
    %60 = arith.cmpf olt, %3, %59 : vector<8x128xf32>
    %61 = arith.extui %60 : vector<8x128xi1> to vector<8x128xi32>
    %62 = arith.sitofp %61 : vector<8x128xi32> to vector<8x128xf32>
    %cst_18 = arith.constant 0.000000e+00 : f32
    %63 = vector.broadcast %cst_18 : f32 to vector<1x128xf32>
    %64 = arith.cmpf ogt, %5, %63 : vector<1x128xf32>
    %cst_19 = arith.constant 0.000000e+00 : f32
    %65 = vector.broadcast %cst_19 : f32 to vector<1x128xf32>
    %66 = arith.select %64, %20, %65 : vector<1x128xi1>, vector<1x128xf32>
    %67 = arith.mulf %58, %28 : vector<8x128xf32>
    %cst_20 = arith.constant 1.000000e+00 : f32
    %68 = vector.broadcast %cst_20 : f32 to vector<8x128xf32>
    %69 = arith.subf %68, %58 : vector<8x128xf32>
    %70 = vector.broadcast %7 : f32 to vector<8x128xf32>
    %71 = arith.subf %3, %70 : vector<8x128xf32>
    %72 = arith.mulf %69, %71 : vector<8x128xf32>
    %73 = arith.subf %12, %62 : vector<8x128xf32>
    %74 = arith.mulf %72, %73 : vector<8x128xf32>
    %75 = arith.addf %67, %74 : vector<8x128xf32>
    %c0_21 = arith.constant 0 : index
    %76 = memref.load %arg7[%c0_21] : memref<2xf32, #tpu.memory_space<smem>>
    %77 = vector.broadcast %32 : vector<1x128xf32> to vector<8x128xf32>
    %78 = arith.mulf %77, %28 : vector<8x128xf32>
    %79 = vector.broadcast %66 : vector<1x128xf32> to vector<8x128xf32>
    %80 = arith.mulf %79, %75 : vector<8x128xf32>
    %81 = arith.addf %78, %80 : vector<8x128xf32>
    %82 = vector.shape_cast %81 : vector<8x128xf32> to vector<1x8x128xf32>
    %cst_22 = arith.constant dense<0.000000e+00> : vector<1xf32>
    %83 = vector.multi_reduction <add>, %82, %cst_22 [1, 2] : vector<1x8x128xf32> to vector<1xf32>
    %84 = vector.shape_cast %83 : vector<1xf32> to vector<1x1x1xf32>
    %85 = vector.extract %84[0, 0, 0] : f32 from vector<1x1x1xf32>
    %86 = arith.addf %76, %85 : f32
    %c0_23 = arith.constant 0 : index
    %87 = memref.load %arg7[%c0_23] : memref<2xf32, #tpu.memory_space<smem>>
    memref.store %86, %arg7[%c0_23] : memref<2xf32, #tpu.memory_space<smem>>
    %c2_i32 = arith.constant 2 : i32
    %88 = arith.cmpi eq, %arg0, %c2_i32 : i32
    %89 = arith.extui %88 : i1 to i32
    %c0_i32_24 = arith.constant 0 : i32
    %90 = arith.cmpi ne, %89, %c0_i32_24 : i32
    scf.if %90 {
      %c0_25 = arith.constant 0 : index
      %91 = memref.load %arg7[%c0_25] : memref<2xf32, #tpu.memory_space<smem>>
      %c1_26 = arith.constant 1 : index
      %92 = memref.load %arg5[%c1_26] : memref<3xf32, #tpu.memory_space<smem>>
      %93 = arith.mulf %91, %92 : f32
      %c0_27 = arith.constant 0 : index
      %c0_28 = arith.constant 0 : index
      %94 = memref.load %arg6[%c0_27, %c0_28] : memref<1x1xf32, #tpu.memory_space<smem>>
      memref.store %93, %arg6[%c0_27, %c0_28] : memref<1x1xf32, #tpu.memory_space<smem>>
    } else {
    }
    return
  }
  func.func @transform_0(%arg0: i32) -> (i32, i32) {
    %c0_i32 = arith.constant 0 : i32
    %c0_i32_0 = arith.constant 0 : i32
    return %c0_i32, %arg0 : i32, i32
  }
  func.func @transform_1(%arg0: i32) -> (i32, i32) {
    %c0_i32 = arith.constant 0 : i32
    %c0_i32_0 = arith.constant 0 : i32
    return %c0_i32, %arg0 : i32, i32
  }
  func.func @transform_2(%arg0: i32) -> (i32, i32) {
    %c0_i32 = arith.constant 0 : i32
    %c0_i32_0 = arith.constant 0 : i32
    %c0_i32_1 = arith.constant 0 : i32
    return %c0_i32, %c0_i32_0 : i32, i32
  }
  func.func @transform_3(%arg0: i32) -> i32 {
    %c0_i32 = arith.constant 0 : i32
    %c0_i32_0 = arith.constant 0 : i32
    return %c0_i32 : i32
  }
  func.func @transform_4(%arg0: i32) -> i32 {
    %c0_i32 = arith.constant 0 : i32
    %c0_i32_0 = arith.constant 0 : i32
    return %c0_i32 : i32
  }
  func.func @transform_5(%arg0: i32) -> (i32, i32) {
    %c0_i32 = arith.constant 0 : i32
    %c0_i32_0 = arith.constant 0 : i32
    %c0_i32_1 = arith.constant 0 : i32
    return %c0_i32, %c0_i32_0 : i32, i32
  }
}

</mosaic_0001>

<bundles_post_ra>
// kernel: tpu_custom_call.1
= control target key start
LH: loop header
LB: loop body
LE: loop exit
PB: predicated region body
PF: predicated region fallthrough
CT: control target
= control target key end

     0   :  { %s825_s0 = inlined_call_operand.hbm [shape: f32[8,384], index: 0, kind: input, shape index: {}]   ;;  %s826_s1 = inlined_call_operand.vmem [shape: f32[2,384], index: 1, kind: input, shape index: {}]   ;;  %s827_s2 = inlined_call_operand.vmem [shape: f32[8,1], index: 2, kind: input, shape index: {}]   ;;  %s828_s3 = inlined_call_operand.<no memory space> [shape: s32[1], index: 3, kind: input, shape index: {}]   ;;  %s829_s4 = inlined_call_operand.vmem [shape: f32[3], index: 4, kind: input, shape index: {}]   ;;  %s830_s5 = inlined_call_operand.hbm [shape: f32[1,1], index: 5, kind: output, shape index: {}]  }
   0x1   :  { %10 = sst [smem:[#allocation3]] %s828_s3 }
   0x2   :  { %11 = vsyncpa [#allocation5], 0 }
   0x3   :  { %13 = vsyncpa [#allocation5 + $0x1], 0 }
   0x4   :  { %14 = vsyncpa [#allocation7], 0 }
   0x5   :  { %15 = vsyncpa [#allocation6], 0  ;;  %s694_s20 = smov 0   ;;  %s696_s21 = smov 0  }
   0x6   :  { %s698_s22 = smov 0   ;;  %s700_s23 = smov 0  }
   0x7 LB: > { %s713_s3 = sadd.s32 4294967295, %s654_s23   ;;  %p41_p0 = scmp.ne.s32.totalorder %s646_s21, %s642_s20  ;;  %s654_s23 = sphi %s700_s23, %s837_s23   ;;  %s650_s22 = sphi %s698_s22, %s836_s22   ;;  %s646_s21 = sphi %s696_s21, %s835_s21   ;;  %s642_s20 = sphi %s694_s20, %s834_s20  }
   0x8   : > { %p42_p1 = scmp.eq.s32.totalorder %s713_s3, 0  ;;  %p460_p2 = scmp.ge.s32.totalorder %s654_s23, 1 }
   0x9   : > { %p162_p3 = scmp.lt.s32.totalorder %s654_s23, 4  ;;  %s180_s27 = sshll.u32 %s829_s4, 4  ;;  %s181_s27 = int_to_ptr.vmem [resolvable:$true] %s180_s27 }
   0xa   : > { %p721_p4 = por %p42_p1, %p41_p0  ;;  %s735_s29 = sadd.s32 1, %s654_s23  }
   0xb   : > { %p728_p5 = pnand %p460_p2, %p162_p3  ;;  %s25_s30 = ssub.s32 %s654_s23, %s735_s29 }
   0xc   : > { %p26_p8 = scmp.eq.s32.totalorder %s25_s30, 0  ;;  %s28_s6 = sadd.s32 1, %s650_s22 }
   0xd   : > { %p497_p6 = pneg %p728_p5  ;;  %p35_p9 = scmp.ne.s32.totalorder %s650_s22, %s646_s21 }
   0xe   : > { %s656_s7 = smov [#allocation8]   ;;  %p36_p10 = scmp.eq.s32.totalorder %s654_s23, 0 }
   0xf   : > { %p498_p7 = pnand %p497_p6, %p42_p1  ;;  %p506_p11 = scmp.lt.s32.totalorder %s654_s23, 3 }
  0x10   : > { %s745_s8 = scalar_select %p26_p8, %s650_s22, %s28_s6  }
  0x11   : > { %500 = dma.vmem_to_smem (!%p498_p7), %s181_s27, 16, %s656_s7, [#allocation7]  }
  0x12   : > { %s191_s9 = sand.u32 1, %s650_s22   ;;  %s464_s10 = sshll.u32 %s654_s23, 3 }
  0x13   : > { %p37_p12 = por %p36_p10, %p35_p9  ;;  %s463_s11 = sshll.u32 %s191_s9, 3 }
  0x14   : > { %s199_s14 = scalar_lea.hbm %s825_s0, %s464_s10  ;;  %s195_s16 = scalar_lea.vmem [#allocation4], %s463_s11 }
  0x15   : > { %s201_s15 = sshll.u32 %s199_s14, 4  ;;  %s203_s17 = sshll.u32 %s195_s16, 4  ;;  %s202_s15 = int_to_ptr.hbm [resolvable:$true] %s201_s15  ;;  %s204_s17 = int_to_ptr.vmem [resolvable:$true] %s203_s17 }
  0x16   : > { %p754_p13 = pnand %p506_p11, %p37_p12  ;;  %s192_s19 = scalar_lea.sflag [#allocation5], %s191_s9 }
  0x17   : > { %s568_s20 = sshra.s32 %s202_s15, 4  ;;  %s575_s27 = scalar_lea.hbm %s825_s0, 24  ;;  %s569_s20 = int_to_ptr.hbm [resolvable:$true] %s568_s20 }
  0x18   : > { %s570_s23 = scalar_lea.hbm %s569_s20, 8  ;;  %p572_p2 = pneg %p754_p13 }
  0x19   : > { %p571_p0 = scmp.ne.s32.totalorder %s569_s20, %s570_s23  ;;  %p576_p7 = scmp.lt.s32.totalorder %s569_s20, %s825_s0 }
  0x1a   : > { %p577_p8 = scmp.lt.s32.totalorder %s575_s27, %s570_s23 }
  0x1b   : > { %p573_p3 = pnand %p572_p2, %p571_p0 }
  0x1c   : > { %p578_p9 = por %p577_p8, %p576_p7 }
  0x1d   : > { %p574_p6 = pneg %p573_p3 }
  0x1f   : > { %p579_p10 = pnand %p578_p9, %p574_p6 }
  0x21   : > { %582 = shalt.err (!%p579_p10)
}
  0x22   : > { %504 = dma.hbm_to_vmem [thread:$0]  (!%p754_p13), %s202_s15, 128, %s204_s17, %s192_s19  }
  0x23   : > { %219 = sbr.rel (%p728_p5) target bundleno = 397 (0x18d), region = 40  ;;  %s221_s7 = sand.u32 (!%p728_p5), 1, %s646_s21  }
  0x24   : > { %s466_s9 = sshll.u32 (!%p728_p5), %s221_s7, 3  ;;  %s222_s10 = scalar_lea.sflag (!%p728_p5), [#allocation5], %s221_s7 }
  0x25   : > { %s225_s11 = scalar_lea.vmem (!%p728_p5), [#allocation4], %s466_s9 }
  0x28   : > { %629 = dma.done.wait (%p721_p4), %s222_s10, 128  }
  0x29   : > { %631 = vsyncadd (%p721_p4), %s222_s10, 4294967168 }
  0x2a   : > { %633 = dma.done.wait (%p42_p1), [#allocation7], 16  }
  0x2b   : > { %635 = vsyncadd (%p42_p1), [#allocation7], 4294967280 }
  0x2c   : > { %236 = sfence }
  0x2d   : > { %v273_v0 = vld [vmem:[%s827_s2] sm:$0xff]  ;;  %v657_v1 = vmov 0   ;;  %p258_p5 = scmp.lt.s32.totalorder %s713_s3, 2  ;;  %v283_v12 = vlaneseq  ;;  %s275_s17 = sld [smem:[#allocation3]]  ;;  %v658_v23 = vmov 0.0  }
  0x2e   : > { %549 = vset.pattern.permute.xlu0 %v657_v1  ;;  %v792_v3 = vld [vmem:[%s225_s11] sm:$0xff]  ;;  %s470_s18 = sshll.u32 %s713_s3, 7  ;;  %s274_s19 = sld [smem:[#allocation8]] }
  0x2f   : > { %278 = vperm.xlu0 %549, %v273_v0   ;;  %s259_s24 = scalar_select %p258_p5, %s713_s3, 2  ;;  %v284_v13 = vand.u32 127, %v283_v12  ;;  %v285_v14 = vstv %s470_s18 }
  0x30   : > { %s659_s20 = smov 0.0   ;;  %s475_s25 = sld [smem:[#allocation8 + $0x1]] }
  0x31   : > { %s468_s13 = sshll.u32 %s259_s24, 1  ;;  %v286_v18 = vadd.s32 %v285_v14, %v284_v13  ;;  %489 = sst [smem:[#allocation2]] (%p42_p1), %s659_s20 }
  0x32   : > { %s787_s16 = scalar_lea.vmem %s826_s1, %s468_s13  ;;  %490 = sst [smem:[#allocation2 + $0x1]] (%p42_p1), %s659_s20 }
  0x33   : > { %v790_v2 = vld [vmem:[%s787_s16] ss:$0 sm:$0xff]  ;;  %v287_v19 = vstv %s275_s17  ;;  %v272_v39 = vld [vmem:[%s787_s16 + $0x1] sm:$0x1]  ;;  %s350_s23 = sld [smem:[#allocation2]]  ;;  %s383_s30 = sshll.u32 %s830_s5, 4  ;;  %s384_s30 = int_to_ptr.hbm [resolvable:$true] %s383_s30 }
  0x34   : > { %v300_v4 = vsub.f32 %v790_v2, %v792_v3  ;;  %vm288_vm1 = vcmp.lt.s32.totalorder %v286_v18, %v287_v19  ;;  %vm292_vm4 = vcmp.lt.f32.partialorder %v792_v3, %v790_v2  ;;  %v337_v35 = vstv %s274_s19  ;;  %p509_p4 = scmp.eq.s32.totalorder %s713_s3, 2  ;;  %s660_s10 = smov [#allocation9]  }
  0x35   : > { %v471_v24 = vsel %vm288_vm1, 1.0, %v658_v23  ;;  %v472_v42 = vsel %vm292_vm4, 1.0, %v658_v23  ;;  %vm338_vm8 = vcmp.lt.f32.partialorder %v792_v3, %v337_v35  ;;  %v295_v45 = vsub.f32 %v792_v3, %v790_v2 }
  0x36   : > { %v301_v5 = vand.u32 2147483647, %v300_v4  ;;  %vm316_vm2 = vcmp.gt.f32.partialorder %v471_v24, 0.0  ;;  %vm298_vm9 = vcmp.lt.f32.partialorder %v272_v39, 1.0  ;;  %vm341_vm11 = vcmp.gt.f32.partialorder %v272_v39, 0.0 }
  0x37   : > { %v345_v47 = vsub.f32 %v792_v3, %v337_v35  ;;  %v473_v49 = vsel %vm338_vm8, 1.0, %v658_v23  ;;  %v299_v51 = vsel %vm298_vm9, %v471_v24, 0.0  ;;  %v342_v52 = vsel %vm341_vm11, %v471_v24, 0.0 }
  0x38   : > { %v302_v6 = vrot.slane %v301_v5, 4  ;;  %v351_v58 = vperm.slane %v299_v51, 0  ;;  %v353_v59 = vperm.slane %v342_v52, 0 }
  0x3a   : > { %v303_v7 = vmin.f32 %v301_v5, %v302_v6 }
  0x3c   : > { %v304_v8 = vrot.slane %v303_v7, 2 }
  0x3e   : > { %v305_v9 = vmin.f32 %v303_v7, %v304_v8 }
  0x40   : > { %v306_v10 = vrot.slane %v305_v9, 1 }
  0x42   : > { %v307_v11 = vmin.f32 %v305_v9, %v306_v10 }
  0x44   : > { %vm308_vm0 = vcmp.eq.f32.partialorder %v301_v5, %v307_v11 }
  0xa1   : > { %v279_v15 = vpop.permute.xlu0 %278 }
  0xa2   : > { %v309_v16 = vsel %vm308_vm0, %v279_v15, 0.0  ;;  %v281_v37 = vsub.f32 1.0, %v279_v15 }
  0xa3   : > { %v310_v17 = vrot.slane %v309_v16, 4 }
  0xa4   : > { %v296_v46 = vsub.f32 %v281_v37, %v472_v42  ;;  %v347_v53 = vsub.f32 %v281_v37, %v473_v49 }
  0xa5   : > { %v311_v20 = vmax.f32 %v309_v16, %v310_v17 }
  0xa6   : > { %v297_v54 = vmul.f32 %v296_v46, %v295_v45 }
  0xa7   : > { %v312_v21 = vrot.slane %v311_v20, 2 }
  0xa8   : > { %v352_v61 = vmul.f32 %v351_v58, %v297_v54 }
  0xa9   : > { %v313_v22 = vmax.f32 %v311_v20, %v312_v21 }
  0xab   : > { %v314_v25 = vrot.slane %v313_v22, 1 }
  0xad   : > { %v315_v26 = vmax.f32 %v313_v22, %v314_v25 }
  0xaf   : > { %v317_v27 = vsel %vm316_vm2, %v315_v26, 0.0 }
  0xb0   : > { %v318_v28 = vsub.f32 1.0, %v317_v27  ;;  %v334_v41 = vsub.f32 %v279_v15, %v317_v27  ;;  %vm333_vm10 = vcmp.lt.f32.partialorder %v279_v15, %v317_v27 }
  0xb2   : > { %551 = vrcp.f32 %v318_v28  ;;  %v330_v32 = vand.u32 2147483648, %v318_v28  ;;  %v328_v34 = vand.u32 2147483647, %v318_v28  ;;  %vm324_vm5 = vweird.f32 %v318_v28 }
  0xb4   : > { %v331_v38 = vor.u32 1.1754944e-38, %v330_v32  ;;  %vm329_vm7 = vcmp.eq.f32.partialorder %v328_v34, 8.507059e+37 }
  0xb8   : > { %v552_v29 = vpop.eup %551 }
  0xb9   : > { %v320_v30 = vmul.f32 %v552_v29, %v318_v28  ;;  %vm325_vm3 = vweird.f32 %v552_v29 }
  0xba   : > { %vm326_vm6 = vmor %vm324_vm5, %vm325_vm3 }
  0xbb   : > { %v321_v31 = vsub.f32 1.0, %v320_v30 }
  0xbd   : > { %v322_v33 = vmul.f32 %v552_v29, %v321_v31 }
  0xbf   : > { %v323_v36 = vadd.f32 %v552_v29, %v322_v33 }
  0xc1   : > { %v327_v40 = vsel %vm326_vm6, %v552_v29, %v323_v36 }
  0xc2   : > { %v332_v43 = vsel %vm329_vm7, %v331_v38, %v327_v40 }
  0xc3   : > { %v335_v44 = vmul.f32 %v334_v41, %v332_v43 }
  0xc5   : > { %v336_v48 = vsel %vm333_vm10, 1.0, %v335_v44 }
  0xc6   : > { %v344_v50 = vsub.f32 1.0, %v336_v48  ;;  %v343_v56 = vmul.f32 %v336_v48, %v297_v54 }
  0xc8   : > { %v346_v55 = vmul.f32 %v345_v47, %v344_v50 }
  0xca   : > { %v348_v57 = vmul.f32 %v347_v53, %v346_v55 }
  0xcc   : > { %v349_v60 = vadd.f32 %v348_v57, %v343_v56 }
  0xce   : > { %v354_v62 = vmul.f32 %v353_v59, %v349_v60 }
  0xd0   : > { %v355_v63 = vadd.f32 %v354_v62, %v352_v61 }
  0xd2   : > { %356 = vadd.xlane.f32.xlu0 %v355_v63 }
 0x145   : > { %v357_v0 = vpop.xlane.xlu0 %356 }
 0x146   : > { %v358_v1 = vrot.slane %v357_v0, 4 }
 0x148   : > { %v359_v2 = vadd.f32 %v358_v1, %v357_v0 }
 0x14a   : > { %v360_v3 = vrot.slane %v359_v2, 2 }
 0x14c   : > { %v361_v4 = vadd.f32 %v360_v3, %v359_v2 }
 0x14e   : > { %v362_v5 = vrot.slane %v361_v4, 1 }
 0x150   : > { %v363_v6 = vadd.f32 %v362_v5, %v361_v4 }
 0x152   : > { %480 = vpush %v363_v6 }
 0x183   : > { %s481_s6 = spop %480 }
 0x184   : > { %s365_s7 = sadd.f32 %s481_s6, %s350_s23 }
 0x186   : > { %367 = sst [smem:[#allocation2]] %s365_s7  ;;  %s374_s9 = smul.f32 %s475_s25, %s365_s7 }
 0x188   : > { %492 = sst [smem:[#allocation9]] (%p509_p4), %s374_s9 }
 0x189   : > { %494 = dma.smem_to_hbm (%p509_p4), %s660_s10, 16, %s384_s30, [#allocation6]  }
 0x18a   : > { %637 = dma.done.wait (%p509_p4), [#allocation6], 16  }
 0x18b   : > { %639 = vsyncadd (%p509_p4), [#allocation6], 4294967280 }
 0x18c   : > { %392 = sfence }
 0x18d PF: > { %p18_p1 = scmp.ge.s32.totalorder %s735_s29, 5   ;;  %s834_s20 = smov %s646_s21 }
 0x18e   : > { %s835_s21 = smov %s650_s22  ;;  %s836_s22 = smov %s745_s8 }
 0x18f   : > { %s837_s23 = smov %s735_s29  ;;  %20 = sbr.rel (!%p18_p1) target bundleno = 7 (0x7), region = 97 }
 0x194   :  { %398 = vsyncpa [#allocation5], 1 }
 0x195   :  { %400 = vsyncpa [#allocation5 + $0x1], 1 }
 0x196   :  { %401 = vsyncpa [#allocation6], 1 }
 0x197   :  { %403 = vsyncpa [#allocation6 + $0x1], 1 }
 0x198   :  { %404 = vsyncpa [#allocation7], 1 }
 0x199   :  { %406 = vsyncpa [#allocation7 + $0x1], 1 }

</bundles_post_ra>
